<compile_context>
chip_gen: v7x
topology: tpu7x:2x2x1
jax: 0.10.0
libtpu: 0.0.40
codegen_flags: <defaults>
</compile_context>

<pallas_src>
import functools
import math

import numpy as np

import jax
import jax.numpy as jnp
from jax.experimental import pallas as pl
from jax.experimental.pallas import tpu as pltpu


# ----------------------------------------------------------------------------
# Host-side glue: bilinear interpolation matrix (half-pixel, align_corners=False)
# Built with NumPy so it is a trace-time constant (no per-call device ops).
# ----------------------------------------------------------------------------
def _bilinear_matrix_np(out_size: int, in_size: int) -> np.ndarray:
    """M of shape (out_size, in_size) s.t. y = M @ x is a 1-D bilinear resize
    with PyTorch's align_corners=False convention."""
    scale = in_size / out_size
    i = np.arange(out_size, dtype=np.float64)
    src = (i + 0.5) * scale - 0.5
    src = np.clip(src, 0.0, float(in_size - 1))
    lo = np.floor(src).astype(np.int64)
    hi = np.minimum(lo + 1, in_size - 1)
    w_hi = (src - lo).astype(np.float32)
    w_lo = (1.0 - w_hi).astype(np.float32)
    m = np.zeros((out_size, in_size), dtype=np.float32)
    rows = np.arange(out_size)
    np.add.at(m, (rows, lo), w_lo)
    np.add.at(m, (rows, hi), w_hi)
    return m


# ----------------------------------------------------------------------------
# TB (planes per grid step) selection against a conservative VMEM budget.
# Prefers a TB that divides B so the last grid step is never ragged.
# ----------------------------------------------------------------------------
def _choose_tb(b, in_h, in_w, out_h, out_w, x_bytes, o_bytes, w_bytes):
    # Sublane (8) alignment requirement for the (TB*H, W) block shapes.
    req = 1
    if in_h % 8:
        req = math.lcm(req, 8 // math.gcd(in_h, 8))
    if out_h % 8:
        req = math.lcm(req, 8 // math.gcd(out_h, 8))

    budget = 24 * 1024 * 1024  # conservative: fits v7x 64 MiB VMEM w/ headroom
    weights = 2 * (out_h * in_h + in_w * out_w) * w_bytes  # double-buffered
    per_plane = (2 * in_h * in_w * x_bytes      # double-buffered input tile
                 + 2 * out_h * out_w * o_bytes  # double-buffered output tile
                 + in_h * out_w * 4)            # f32 intermediate
    fit = max(1, (budget - weights) // per_plane)
    cap = min(32, int(fit), b)                  # 32 also caps in-kernel unroll

    # Largest aligned TB that divides B (no ragged last block); else largest
    # aligned TB (Pallas masks the ragged tail); else the minimal aligned TB.
    best_aligned = 0
    for t in range(cap, 0, -1):
        aligned = (t % req == 0) or (t == b)    # t == b -> block == full dim
        if not aligned:
            continue
        if best_aligned == 0:
            best_aligned = t
        if b % t == 0:
            return t
    if best_aligned:
        return best_aligned
    return min(b, req)


# ----------------------------------------------------------------------------
# Pallas kernel: TB planes per grid step.
#   W-resize : (TB*H_in, W_in) @ WwT            -- one big MXU matmul
#   H-resize : Wh @ t_plane, unrolled over TB   -- 2-D matmuls, static slices
# ----------------------------------------------------------------------------
def _resize_kernel(x_ref, wh_ref, wwt_ref, o_ref, *, compute_dtype):
    out_h, in_h = wh_ref.shape
    in_w, out_w = wwt_ref.shape
    tb = x_ref.shape[0] // in_h

    x = x_ref[...].astype(compute_dtype)          # (TB*H_in, W_in)
    wh = wh_ref[...]                              # (H_out, H_in)
    wwt = wwt_ref[...]                            # (W_in, W_out) pre-transposed

    # Width resize: single big matmul, M = TB*H_in, f32 accumulate.
    t = jnp.dot(x, wwt, preferred_element_type=jnp.float32)   # (TB*H_in, W_out)

    # Height resize: per-plane 2-D matmuls, statically unrolled over TB.
    for p in range(tb):
        tp = t[p * in_h:(p + 1) * in_h, :].astype(compute_dtype)   # (H_in, W_out)
        yp = jnp.dot(wh, tp, preferred_element_type=jnp.float32)   # (H_out, W_out)
        o_ref[p * out_h:(p + 1) * out_h, :] = yp.astype(o_ref.dtype)


@functools.partial(jax.jit, static_argnames=("size", "compute_dtype"))
def pallas_resize(x: jnp.ndarray, size, compute_dtype=jnp.float32) -> jnp.ndarray:
    """Bilinear resize of the last two dims of x (any leading dims) to `size`."""
    # TODO(synk): torchvision Resize with an int size resizes the SHORTER edge
    # (aspect-preserving); here int means square (size, size) like F.interpolate.
    if isinstance(size, int):
        out_h, out_w = size, size
    else:
        out_h, out_w = size

    *lead, in_h, in_w = x.shape
    if (in_h, in_w) == (out_h, out_w):
        # Half-pixel bilinear resize to the same size is the identity.
        return x

    b = 1
    for d in lead:
        b *= d
    x2d = x.reshape(b * in_h, in_w)               # contiguous -> free reshape

    # Interpolation weights: NumPy trace-time constants. Ww pre-transposed.
    wh = jnp.asarray(_bilinear_matrix_np(out_h, in_h), dtype=compute_dtype)   # (H_out, H_in)
    wwt = jnp.asarray(_bilinear_matrix_np(out_w, in_w).T, dtype=compute_dtype)  # (W_in, W_out)

    x_bytes = x.dtype.itemsize
    w_bytes = jnp.dtype(compute_dtype).itemsize
    tb = _choose_tb(b, in_h, in_w, out_h, out_w, x_bytes, x_bytes, w_bytes)
    grid = pl.cdiv(b, tb)

    # VMEM limit derived from the actual double-buffered footprint (+margin),
    # clamped to [32 MiB scoped default, 64 MiB v7x physical].
    weights_vmem = 2 * (out_h * in_h + in_w * out_w) * w_bytes
    per_step_vmem = (2 * tb * in_h * in_w * x_bytes
                     + 2 * tb * out_h * out_w * x_bytes
                     + tb * in_h * out_w * 4)
    vmem_limit = int(min(64 * 1024 * 1024,
                         max(32 * 1024 * 1024,
                             1.5 * (weights_vmem + per_step_vmem))))

    flops = 2 * b * (in_h * in_w * out_w + out_h * in_h * out_w)
    bytes_accessed = (b * in_h * in_w * x_bytes
                      + b * out_h * out_w * x_bytes
                      + (out_h * in_h + in_w * out_w) * w_bytes)

    # TODO(synk): Wh/WwT have constant index_maps; pipeline_mode=pl.Buffered(1)
    # would halve their (tiny) buffers, but is skipped for lowering robustness.
    out2d = pl.pallas_call(
        functools.partial(_resize_kernel, compute_dtype=compute_dtype),
        out_shape=jax.ShapeDtypeStruct((b * out_h, out_w), x.dtype),
        grid_spec=pltpu.PrefetchScalarGridSpec(
            num_scalar_prefetch=0,
            grid=(grid,),
            in_specs=[
                pl.BlockSpec((tb * in_h, in_w), lambda i: (i, 0)),
                pl.BlockSpec((out_h, in_h), lambda i: (0, 0)),
                pl.BlockSpec((in_w, out_w), lambda i: (0, 0)),
            ],
            out_specs=pl.BlockSpec((tb * out_h, out_w), lambda i: (i, 0)),
        ),
        compiler_params=pltpu.CompilerParams(
            dimension_semantics=("parallel",),
            vmem_limit_bytes=vmem_limit,
        ),
        cost_estimate=pl.CostEstimate(
            flops=flops, transcendentals=0, bytes_accessed=bytes_accessed),
    )(x2d, wh, wwt)

    return out2d.reshape(*lead, out_h, out_w)


# ----------------------------------------------------------------------------
# PairResize module equivalent
# ----------------------------------------------------------------------------
class PairResizePallas:
    # TODO(synk): torchvision Resize on tensors now defaults to antialias=True
    # when downscaling; this implements the classic non-antialiased bilinear.
    # TODO(synk): if the mask must stay hard-labelled, swap in a nearest-mode
    # (one-hot rows) interpolation matrix for the mask path.
    def __init__(self, size, compute_dtype=jnp.float32):
        self.size = size
        self.compute_dtype = compute_dtype

    def __call__(self, img, **kwargs):
        kwargs = dict(kwargs)
        kwargs["mask"] = pallas_resize(kwargs["mask"], self.size,
                                       compute_dtype=self.compute_dtype)
        img = pallas_resize(img, self.size, compute_dtype=self.compute_dtype)
        return img, kwargs


# ----------------------------------------------------------------------------
# Pure-JAX reference (same bilinear formula) for sanity checks
# ----------------------------------------------------------------------------
def _ref_resize(x, size):
    out_h, out_w = (size, size) if isinstance(size, int) else size
    *lead, in_h, in_w = x.shape
    wh = jnp.asarray(_bilinear_matrix_np(out_h, in_h))
    ww = jnp.asarray(_bilinear_matrix_np(out_w, in_w))
    return jnp.einsum("oh,...hw,pw->...op", wh, x.astype(jnp.float32), ww).astype(x.dtype)


if __name__ == "__main__":
    key = jax.random.PRNGKey(0)
    k_img, k_mask = jax.random.split(key)

    # Small NCHW example inputs.
    img = jax.random.normal(k_img, (2, 4, 16, 16), dtype=jnp.float32)
    mask = (jax.random.uniform(k_mask, (2, 1, 16, 16)) > 0.5).astype(jnp.float32)

    size = 8
    module = PairResizePallas(size=size)

    img_out, kw_out = module(img, mask=mask)
    img_out = jax.block_until_ready(img_out)
    mask_out = jax.block_until_ready(kw_out["mask"])

    assert img_out.shape == (2, 4, 8, 8), img_out.shape
    assert mask_out.shape == (2, 1, 8, 8), mask_out.shape

    # Sanity check against pure-JAX reference of the same bilinear formula.
    ref_img = _ref_resize(img, size)
    ref_mask = _ref_resize(mask, size)
    assert jnp.allclose(img_out, ref_img, atol=1e-5, rtol=1e-5)
    assert jnp.allclose(mask_out, ref_mask, atol=1e-5, rtol=1e-5)

    # Non-square upscale path.
    up = jax.block_until_ready(pallas_resize(img, (24, 20)))
    assert up.shape == (2, 4, 24, 20), up.shape
    assert jnp.allclose(up, _ref_resize(img, (24, 20)), atol=1e-5, rtol=1e-5)

    # Identity fast path (resize to the same size is the identity).
    same = jax.block_until_ready(pallas_resize(img, (16, 16)))
    assert jnp.array_equal(same, img)

    # Optional bf16 MXU-feed fast path (f32 accumulate), loose tolerance.
    img_bf16 = jax.block_until_ready(
        pallas_resize(img, size, compute_dtype=jnp.bfloat16))
    assert jnp.allclose(img_bf16, ref_img, atol=5e-2, rtol=5e-2)

    print("KERNEL_OK")
</pallas_src>

<mosaic_0001>
module attributes {stable_mosaic.version = 11 : i64} {
  func.func @_resize_kernel(%arg0: i32, %arg1: memref<32x16xf32, #tpu.memory_space<vmem>>, %arg2: memref<8x16xf32, #tpu.memory_space<vmem>>, %arg3: memref<16x8xf32, #tpu.memory_space<vmem>>, %arg4: memref<16x8xf32, #tpu.memory_space<vmem>>) attributes {dimension_semantics = [#tpu.dimension_semantics<parallel>], iteration_bounds = array<i64: 1>, scalar_prefetch = 0 : i64, scratch_operands = 0 : i64, tpu.core_type = #tpu.core_type<tc>, window_params = [{transform_indices = @transform_0, window_bounds = array<i64: 32, 16>}, {pipeline_mode = #tpu.pipeline_mode<synchronous>, transform_indices = @transform_1, window_bounds = array<i64: 8, 16>}, {pipeline_mode = #tpu.pipeline_mode<synchronous>, transform_indices = @transform_2, window_bounds = array<i64: 16, 8>}, {transform_indices = @transform_3, window_bounds = array<i64: 16, 8>}]} {
    %c0 = arith.constant 0 : index
    %c0_0 = arith.constant 0 : index
    %0 = vector.load %arg1[%c0, %c0_0] : memref<32x16xf32, #tpu.memory_space<vmem>>, vector<32x16xf32>
    %c0_1 = arith.constant 0 : index
    %c0_2 = arith.constant 0 : index
    %1 = vector.load %arg2[%c0_1, %c0_2] : memref<8x16xf32, #tpu.memory_space<vmem>>, vector<8x16xf32>
    %c0_3 = arith.constant 0 : index
    %c0_4 = arith.constant 0 : index
    %2 = vector.load %arg3[%c0_3, %c0_4] : memref<16x8xf32, #tpu.memory_space<vmem>>, vector<16x8xf32>
    %cst = arith.constant dense<0.000000e+00> : vector<32x8xf32>
    %3 = tpu.matmul %0, %2, %cst {dimension_numbers = #tpu.dot_dimension_numbers<[1], [0], [0], [1], [0, 0, 1, 1], [], []>} : vector<32x16xf32>, vector<16x8xf32>, vector<32x8xf32> -> vector<32x8xf32>
    %4 = vector.extract_strided_slice %3 {offsets = [0, 0], sizes = [16, 8], strides = [1, 1]} : vector<32x8xf32> to vector<16x8xf32>
    %cst_5 = arith.constant dense<0.000000e+00> : vector<8x8xf32>
    %5 = tpu.matmul %1, %4, %cst_5 {dimension_numbers = #tpu.dot_dimension_numbers<[1], [0], [0], [1], [0, 0, 1, 1], [], []>} : vector<8x16xf32>, vector<16x8xf32>, vector<8x8xf32> -> vector<8x8xf32>
    %c0_6 = arith.constant 0 : index
    %c0_7 = arith.constant 0 : index
    %6 = vector.load %arg4[%c0_6, %c0_7] : memref<16x8xf32, #tpu.memory_space<vmem>>, vector<8x8xf32>
    tpu.vector_store %arg4[%c0_6, %c0_7], %5 {strides = array<i32>} : memref<16x8xf32, #tpu.memory_space<vmem>>, vector<8x8xf32>,
    %7 = vector.extract_strided_slice %3 {offsets = [16, 0], sizes = [16, 8], strides = [1, 1]} : vector<32x8xf32> to vector<16x8xf32>
    %cst_8 = arith.constant dense<0.000000e+00> : vector<8x8xf32>
    %8 = tpu.matmul %1, %7, %cst_8 {dimension_numbers = #tpu.dot_dimension_numbers<[1], [0], [0], [1], [0, 0, 1, 1], [], []>} : vector<8x16xf32>, vector<16x8xf32>, vector<8x8xf32> -> vector<8x8xf32>
    %c8 = arith.constant 8 : index
    %c0_9 = arith.constant 0 : index
    %9 = vector.load %arg4[%c8, %c0_9] : memref<16x8xf32, #tpu.memory_space<vmem>>, vector<8x8xf32>
    tpu.vector_store %arg4[%c8, %c0_9], %8 {strides = array<i32>} : memref<16x8xf32, #tpu.memory_space<vmem>>, vector<8x8xf32>,
    return
  }
  func.func @transform_0(%arg0: i32) -> (i32, i32) {
    %c0_i32 = arith.constant 0 : i32
    %c0_i32_0 = arith.constant 0 : i32
    return %arg0, %c0_i32 : i32, i32
  }
  func.func @transform_1(%arg0: i32) -> (i32, i32) {
    %c0_i32 = arith.constant 0 : i32
    %c0_i32_0 = arith.constant 0 : i32
    %c0_i32_1 = arith.constant 0 : i32
    return %c0_i32, %c0_i32_0 : i32, i32
  }
  func.func @transform_2(%arg0: i32) -> (i32, i32) {
    %c0_i32 = arith.constant 0 : i32
    %c0_i32_0 = arith.constant 0 : i32
    %c0_i32_1 = arith.constant 0 : i32
    return %c0_i32, %c0_i32_0 : i32, i32
  }
  func.func @transform_3(%arg0: i32) -> (i32, i32) {
    %c0_i32 = arith.constant 0 : i32
    %c0_i32_0 = arith.constant 0 : i32
    return %arg0, %c0_i32 : i32, i32
  }
}

</mosaic_0001>

<bundles_post_ra>
// kernel: pallas_resize.1
= control target key start
LH: loop header
LB: loop body
LE: loop exit
PB: predicated region body
PF: predicated region fallthrough
CT: control target
= control target key end

     0   :  { %8 = vsyncpa [#allocation3], 0  ;;  %s577_s0 = inlined_call_operand.hbm [shape: f32[32,16], index: 0, kind: input, shape index: {}]   ;;  %s578_s1 = inlined_call_operand.hbm [shape: f32[8,16], index: 1, kind: input, shape index: {}]   ;;  %s579_s2 = inlined_call_operand.hbm [shape: f32[16,8], index: 2, kind: input, shape index: {}]   ;;  %s580_s3 = inlined_call_operand.hbm [shape: f32[16,8], index: 3, kind: output, shape index: {}]  }
   0x1   :  { %9 = vsyncpa [#allocation6], 0 }
   0x2   :  { %10 = vsyncpa [#allocation4], 0  ;;  %s478_s12 = smov [#allocation5]   ;;  %s479_s14 = smov [#allocation2]  }
   0x3   :  { %s29_s13 = sshll.u32 %s478_s12, 4  ;;  %s16_s15 = sshll.u32 %s479_s14, 4  ;;  %s30_s13 = int_to_ptr.vmem [resolvable:$true] %s29_s13  ;;  %s507_s15 = int_to_ptr.vmem [resolvable:$true] %s16_s15 }
   0x4   :  { %s384_s18 = scalar_lea.hbm %s578_s1, 128 }
   0x5   :  { %p385_p0 = scmp.ne.s32.totalorder %s578_s1, %s384_s18  ;;  %p388_p1 = scmp.lt.u32.totalorder %s384_s18, %s578_s1 }
   0x7   :  { %p390_p2 = pnand %p388_p1, %p385_p0 }
   0x9   :  { %393 = shalt.err (!%p390_p2)
}
   0xa   :  { %s394_s23 = scalar_lea.vmem %s30_s13, 128  ;;  %p399_p4 = scmp.lt.s32.totalorder %s30_s13, %s30_s13 }
   0xb   :  { %p395_p3 = scmp.ne.s32.totalorder %s30_s13, %s394_s23  ;;  %p400_p5 = scmp.lt.s32.totalorder %s394_s23, %s394_s23 }
   0xd   :  { %p401_p6 = por %p400_p5, %p399_p4 }
   0xf   :  { %p402_p7 = pnand %p401_p6, %p395_p3 }
  0x11   :  { %405 = shalt.err (!%p402_p7)
}
  0x12   :  { %32 = dma.hbm_to_vmem [thread:$0]  %s578_s1, 128, %s30_s13, [#allocation6]  }
  0x13   :  { %s406_s28 = scalar_lea.hbm %s577_s0, 512 }
  0x14   :  { %p407_p8 = scmp.ne.s32.totalorder %s577_s0, %s406_s28  ;;  %p410_p9 = scmp.lt.u32.totalorder %s406_s28, %s577_s0 }
  0x16   :  { %p412_p10 = pnand %p410_p9, %p407_p8 }
  0x18   :  { %415 = shalt.err (!%p412_p10)
}
  0x19   :  { %s416_s6 = scalar_lea.vmem %s507_s15, 512  ;;  %p421_p12 = scmp.lt.s32.totalorder %s507_s15, %s507_s15 }
  0x1a   :  { %p417_p11 = scmp.ne.s32.totalorder %s507_s15, %s416_s6  ;;  %p422_p13 = scmp.lt.s32.totalorder %s416_s6, %s416_s6 }
  0x1c   :  { %p423_p0 = por %p422_p13, %p421_p12 }
  0x1e   :  { %p424_p1 = pnand %p423_p0, %p417_p11 }
  0x20   :  { %427 = shalt.err (!%p424_p1)
}
  0x21   :  { %s480_s1 = smov 128   ;;  %s481_s7 = smov 8  }
  0x22   :  { %22 = dma.hbm_to_vmem [thread:$0]  %s577_s0, 512, %s507_s15, [#allocation3], %s480_s1, %s480_s1, %s481_s7  }
  0x23   :  { %s482_s10 = smov [#allocation7]   ;;  %s428_s14 = scalar_lea.hbm %s579_s2, 256 }
  0x24   :  { %s38_s11 = sshll.u32 %s482_s10, 4  ;;  %p429_p2 = scmp.ne.s32.totalorder %s579_s2, %s428_s14  ;;  %s39_s11 = int_to_ptr.vmem [resolvable:$true] %s38_s11 }
  0x25   :  { %p432_p3 = scmp.lt.u32.totalorder %s428_s14, %s579_s2 }
  0x27   :  { %p434_p4 = pnand %p432_p3, %p429_p2 }
  0x29   :  { %437 = shalt.err (!%p434_p4)
}
  0x2a   :  { %s438_s20 = scalar_lea.vmem %s39_s11, 256  ;;  %p443_p6 = scmp.lt.s32.totalorder %s39_s11, %s39_s11 }
  0x2b   :  { %p439_p5 = scmp.ne.s32.totalorder %s39_s11, %s438_s20  ;;  %p444_p7 = scmp.lt.s32.totalorder %s438_s20, %s438_s20 }
  0x2d   :  { %p445_p8 = por %p444_p7, %p443_p6 }
  0x2f   :  { %p446_p9 = pnand %p445_p8, %p439_p5 }
  0x31   :  { %449 = shalt.err (!%p446_p9)
}
  0x32   :  { %44 = dma.hbm_to_vmem [thread:$0]  %s579_s2, 256, %s39_s11, [#allocation6], %s480_s1, %s480_s1, %s481_s7  }
  0x33   :  { %472 = dma.done.wait [#allocation3], 512  }
  0x34   :  { %473 = vsyncadd [#allocation3], 4294966784 }
  0x35   :  { %474 = dma.done.wait [#allocation6], 384  }
  0x36   :  { %475 = vsyncadd [#allocation6], 4294966912  ;;  %vm61_vm0 = vcmask 130048   ;;  %v59_v0 = vld [vmem:[#allocation7] sm:$0xff]  ;;  %v60_v1 = vld [vmem:[#allocation7 + $0x8] sm:$0xff]  ;;  %v483_v7 = vmov 0.0|0.0  }
  0x37   :  { %v54_v2 = vld [vmem:[#allocation2] sm:$0xff]  ;;  %v365_v3 = vpack.c.bf16 %v60_v1, %v59_v0  ;;  %v55_v4 = vld [vmem:[#allocation2 + $0x8] sm:$0xff]  ;;  %v56_v5 = vld [vmem:[#allocation2 + $0x10] sm:$0xff]  ;;  %369 = vmatprep.subr.bf16.mxu1 %v483_v7  ;;  %vm484_vm1 = vmmov 0   ;;  %v485_v8 = vmov 0.0   ;;  %vm232_vm2 = vcmask 64512  }
  0x38   :  { %345 = vmatprep.mubr.msk.f32.mxu0 %vm61_vm0, %v54_v2  ;;  %v57_v6 = vld [vmem:[#allocation2 + $0x18] sm:$0xff]  ;;  %355 = vmatprep.mubr.msk.f32.mxu1 %vm484_vm1, %v485_v8  ;;  %v58_v13 = vld [vmem:[#allocation5] sm:$0xff]  ;;  %s486_s2 = smov [#allocation8]  }
  0x39   :  { %366 = vmatprep.subr.bf16.mxu0 %v365_v3  ;;  %s310_s21 = sshll.u32 %s486_s2, 4  ;;  %s311_s21 = int_to_ptr.vmem [resolvable:$true] %s310_s21 }
  0x3a   :  { %368 = vmatpush3.bf16.msra.mxu0 %v365_v3  ;;  %s450_s22 = scalar_lea.vmem %s311_s21, 256  ;;  %p455_p11 = scmp.lt.s32.totalorder %s311_s21, %s311_s21 }
  0x3b   :  { %p451_p10 = scmp.ne.s32.totalorder %s311_s21, %s450_s22  ;;  %p456_p12 = scmp.lt.s32.totalorder %s450_s22, %s450_s22 }
  0x3d   :  { %346 = vmatmul.mubr.msk.f32.vlgmr.msra.gmra.mrb[0].mxu0 %vm61_vm0, %v55_v4  ;;  %p457_p13 = por %p456_p12, %p455_p11 }
  0x3e   :  { %348 = vmatprep.mubr.msk.f32.mxu0 %vm61_vm0, %v56_v5 }
  0x3f   :  { %p458_p0 = pnand %p457_p13, %p451_p10 }
  0x41   :  { %349 = vmatmul.mubr.msk.f32.gmra.mrb[2].mxu0 %vm61_vm0, %v57_v6 }
 0x110   :  { %v347_v9 = vpop.f32.mrb[0].mxu0 }
 0x111   :  { %v140_v10 = vpop.f32.mrb[1].mxu0 }
 0x112   :  { %v370_v11 = vpack.c.bf16 %v347_v9, %v140_v10 }
 0x114   :  { %v350_v12 = vpop.f32.mrb[2].mxu0  ;;  %371 = vmatpush3.bf16.msra.mxu1 %v370_v11 }
 0x115   :  { %v150_v14 = vpop.f32.mrb[3].mxu0  ;;  %372 = vmatprep.subr.bf16.mxu1 %v483_v7 }
 0x116   :  { %v373_v15 = vpack.c.bf16 %v350_v12, %v150_v14 }
 0x117   :  { %356 = vmatmul.mubr.msk.f32.vlgmr.msra.gmra.mrb[0].mxu1 %vm61_vm0, %v58_v13 }
 0x118   :  { %374 = vmatpush3.bf16.msra.mxu1 %v373_v15  ;;  %362 = vmatprep.mubr.msk.f32.mxu1 %vm484_vm1, %v485_v8 }
 0x11b   :  { %363 = vmatmul.mubr.msk.f32.vlgmr.msra.gmra.mrb[2].mxu1 %vm61_vm0, %v58_v13 }
 0x1ea   :  { %v228_v16 = vpop.f32.mrb[0].mxu1 }
 0x1eb   :  { %233 = vst.msk [vmem:[#allocation8] sm:$0xff] %vm232_vm2, %v228_v16  ;;  %v357_v17 = vpop.f32.mrb[1].mxu1 }
 0x1ee   :  { %v300_v18 = vpop.f32.mrb[2].mxu1 }
 0x1ef   :  { %304 = vst.msk [vmem:[#allocation8 + $0x8] sm:$0xff] %vm232_vm2, %v300_v18  ;;  %v364_v19 = vpop.f32.mrb[3].mxu1 }
 0x1f0   :  { %461 = shalt.err (!%p458_p0)
}
 0x1f1   :  { %s462_s25 = scalar_lea.hbm %s580_s3, 256 }
 0x1f2   :  { %p463_p1 = scmp.ne.s32.totalorder %s580_s3, %s462_s25  ;;  %p466_p2 = scmp.lt.u32.totalorder %s462_s25, %s580_s3 }
 0x1f4   :  { %p468_p3 = pnand %p466_p2, %p463_p1 }
 0x1f6   :  { %471 = shalt.err (!%p468_p3)
}
 0x1f7   :  { %316 = dma.vmem_to_hbm [thread:$0]  %s311_s21, 256, %s580_s3, [#allocation4], %s480_s1, %s480_s1, %s481_s7  }
 0x1f8   :  { %476 = dma.done.wait [#allocation4], 256  }
 0x1f9   :  { %477 = vsyncadd [#allocation4], 4294967040 }
 0x1fa   :  { %320 = vsyncpa [#allocation3], 1 }
 0x1fb   :  { %321 = vsyncpa [#allocation6], 1 }
 0x1fc   :  { %322 = vsyncpa [#allocation4], 1 }

</bundles_post_ra>
